<compile_context>
chip_gen: v6e
topology: v6e:2x2x1
jax: 0.10.0
libtpu: 0.0.40
codegen_flags: <defaults>
</compile_context>

<pallas_src>
import jax
import jax.numpy as jnp
import numpy as np
from jax.experimental import pallas as pl
from jax.experimental.pallas import tpu as pltpu

LN_EPS = 1e-5                      # PyTorch nn.LayerNorm default
_INV_SQRT2 = 0.7071067811865476    # 1/sqrt(2) for exact (erf) GELU


def _fused_kernel(xg_ref, eg_ref, xb_ref, eb_ref, x2_ref, e2_ref,
                  lnw_x_ref, lnw_e_ref, lnb_x_ref, lnb_e_ref,
                  w1x_ref, w1e_ref, b1_ref, w2_ref, b2_ref,
                  out_ref):
    """LN(2C) -> Linear(2C->C) -> GELU -> Linear(C->2C) -> gamma*x + beta*e, fused."""
    tn = xg_ref.shape[0]
    C = xg_ref.shape[1]
    two_c = 2.0 * C

    # Stack gamma-source rows on top of beta-source rows: one (2*tn, C) slab per
    # operand, so the MLP runs once with a 2*tn-row M dimension for the MXU.
    xr = jnp.concatenate([xg_ref[...], xb_ref[...]], axis=0).astype(jnp.float32)
    er = jnp.concatenate([eg_ref[...], eb_ref[...]], axis=0).astype(jnp.float32)

    # LayerNorm over the virtual concat([x, e], -1) of width 2C, computed from the
    # two halves (no lane-dim concatenation ever materialized).
    mean = (jnp.sum(xr, axis=-1, keepdims=True) +
            jnp.sum(er, axis=-1, keepdims=True)) / two_c
    xc = xr - mean
    ec = er - mean
    var = (jnp.sum(xc * xc, axis=-1, keepdims=True) +
           jnp.sum(ec * ec, axis=-1, keepdims=True)) / two_c
    inv = jax.lax.rsqrt(var + LN_EPS)
    xn = xc * inv * lnw_x_ref[...] + lnb_x_ref[...]
    en = ec * inv * lnw_e_ref[...] + lnb_e_ref[...]

    # Linear(2C -> C), split along the 2C input features; bf16 operands into the
    # MXU, f32 accumulation (elementwise math stays f32 — friendly to v5e VPU/EUP).
    h = (jnp.dot(xn.astype(jnp.bfloat16), w1x_ref[...],
                 preferred_element_type=jnp.float32) +
         jnp.dot(en.astype(jnp.bfloat16), w1e_ref[...],
                 preferred_element_type=jnp.float32) + b1_ref[...])

    # exact erf-based GELU (torch.nn.GELU() default)
    h = 0.5 * h * (1.0 + jax.lax.erf(h * _INV_SQRT2))

    # Linear(C -> 2C)
    o = jnp.dot(h.astype(jnp.bfloat16), w2_ref[...],
                preferred_element_type=jnp.float32) + b2_ref[...]       # (2*tn, 2C)

    # First tn rows are the gamma rows, last tn the beta rows (in the merged 2C view).
    gamma = o[:tn, :]
    beta = o[tn:, :]
    out_ref[...] = (gamma * x2_ref[...].astype(jnp.float32) +
                    beta * e2_ref[...].astype(jnp.float32)).astype(out_ref.dtype)


def _pick_row_tile(half_rows, C):
    """Largest divisor of `half_rows` (rows per grid step over the N/2 axis) that
    keeps the per-step VMEM footprint ~<=12 MiB and, when possible, is sublane
    (8)-aligned. Each grid step touches 2*tile MLP rows + 2*tile affine rows."""
    # ~120 * tile * C bytes: f32 in/out tiles (double-buffered) + in-kernel temps.
    cap = max(8, min(512, (12 * 1024 * 1024) // (120 * max(C, 1))))
    cap = min(cap, half_rows)
    for d in range(cap, 0, -1):           # prefer an 8-aligned divisor
        if half_rows % d == 0 and d % 8 == 0:
            return d
    for d in range(cap, 0, -1):           # fallback: any divisor (may be slower)
        if half_rows % d == 0:
            return d
    return half_rows


@jax.jit
def feature_wise_affine(x, text_embed, params):
    """Pallas implementation of FeatureWiseAffine.forward (use_affine_level=True)."""
    B, N, C = x.shape
    assert text_embed.shape == (B, N, C)
    if N % 2 != 0:
        # TODO(synk): odd sequence length needs an un-fused gamma/beta gather path.
        raise NotImplementedError("feature_wise_affine: even sequence length required")
    C2 = 2 * C
    half = N // 2
    tn = _pick_row_tile(half, C)
    ht = half // tn            # row tiles per batch element (over the N/2 axis)
    npb = N // tn              # tn-sized blocks per batch in the flat (B*N, C) view

    # Free, contiguous views (no HBM copies).
    xf = x.reshape(B * N, C)
    ef = text_embed.reshape(B * N, C)
    x2 = x.reshape(B * half, C2)
    e2 = text_embed.reshape(B * half, C2)

    lnw = params["ln_w"].reshape(1, C2)
    lnb = params["ln_b"].reshape(1, C2)
    w1 = params["w1"]                       # (2C, C)
    b1 = params["b1"].reshape(1, C)
    w2 = params["w2"]                       # (C, 2C)
    b2 = params["b2"].reshape(1, C2)

    # Pre-split the 2C-feature params into x-half / e-half (lane concat avoided in
    # kernel) and pre-cast the matmul weights to bf16 once.
    lnw_x, lnw_e = lnw[:, :C], lnw[:, C:]
    lnb_x, lnb_e = lnb[:, :C], lnb[:, C:]
    w1x = w1[:C, :].astype(jnp.bfloat16)
    w1e = w1[C:, :].astype(jnp.bfloat16)
    w2b = w2.astype(jnp.bfloat16)

    data_specs = [
        pl.BlockSpec((tn, C), lambda b, j: (b * npb + j, 0)),        # x gamma-src rows
        pl.BlockSpec((tn, C), lambda b, j: (b * npb + j, 0)),        # e gamma-src rows
        pl.BlockSpec((tn, C), lambda b, j: (b * npb + ht + j, 0)),   # x beta-src rows
        pl.BlockSpec((tn, C), lambda b, j: (b * npb + ht + j, 0)),   # e beta-src rows
        pl.BlockSpec((tn, C2), lambda b, j: (b * ht + j, 0)),        # x, merged 2C view
        pl.BlockSpec((tn, C2), lambda b, j: (b * ht + j, 0)),        # e, merged 2C view
    ]
    # Constant-index whole-array blocks: fetched once, resident across grid steps.
    param_specs = [
        pl.BlockSpec((1, C), lambda b, j: (0, 0)),    # lnw_x
        pl.BlockSpec((1, C), lambda b, j: (0, 0)),    # lnw_e
        pl.BlockSpec((1, C), lambda b, j: (0, 0)),    # lnb_x
        pl.BlockSpec((1, C), lambda b, j: (0, 0)),    # lnb_e
        pl.BlockSpec((C, C), lambda b, j: (0, 0)),    # w1 (x-half), bf16
        pl.BlockSpec((C, C), lambda b, j: (0, 0)),    # w1 (e-half), bf16
        pl.BlockSpec((1, C), lambda b, j: (0, 0)),    # b1
        pl.BlockSpec((C, C2), lambda b, j: (0, 0)),   # w2, bf16
        pl.BlockSpec((1, C2), lambda b, j: (0, 0)),   # b2
    ]

    out2 = pl.pallas_call(
        _fused_kernel,
        out_shape=jax.ShapeDtypeStruct((B * half, C2), x.dtype),
        grid=(B, ht),
        in_specs=data_specs + param_specs,
        out_specs=pl.BlockSpec((tn, C2), lambda b, j: (b * ht + j, 0)),
        compiler_params=pltpu.CompilerParams(
            dimension_semantics=("parallel", "parallel"),
            vmem_limit_bytes=32 * 1024 * 1024),
    )(xf, ef, xf, ef, x2, e2,
      lnw_x, lnw_e, lnb_x, lnb_e, w1x, w1e, b1, w2b, b2)

    return out2.reshape(B, N, C)


def _reference(x, text_embed, params):
    """Pure-JAX mirror of the PyTorch forward (f32 everywhere)."""
    B, N, C = x.shape
    t = jnp.concatenate([x, text_embed], axis=-1)
    mean = jnp.mean(t, axis=-1, keepdims=True)
    var = jnp.mean((t - mean) ** 2, axis=-1, keepdims=True)
    tnorm = (t - mean) / jnp.sqrt(var + LN_EPS)
    tnorm = tnorm * params["ln_w"].reshape(1, 1, 2 * C) + params["ln_b"].reshape(1, 1, 2 * C)
    h = tnorm @ params["w1"] + params["b1"].reshape(1, 1, C)
    h = 0.5 * h * (1.0 + jax.lax.erf(h * _INV_SQRT2))
    o = h @ params["w2"] + params["b2"].reshape(1, 1, 2 * C)
    reshaped = o.reshape(B, 2 * N, C)
    gamma, beta = reshaped[:, :N, :], reshaped[:, N:, :]
    return gamma * x + beta * text_embed


def init_params(key, in_channels):
    """Synthetic params with the PyTorch module's shapes (out_channels == in_channels)."""
    C = in_channels
    k1, k2, k3, k4, k5, k6 = jax.random.split(key, 6)
    return {
        "ln_w": (1.0 + 0.1 * jax.random.normal(k1, (2 * C,))).astype(jnp.float32),
        "ln_b": (0.1 * jax.random.normal(k2, (2 * C,))).astype(jnp.float32),
        "w1": (0.02 * jax.random.normal(k3, (2 * C, C))).astype(jnp.float32),
        "b1": (0.1 * jax.random.normal(k4, (C,))).astype(jnp.float32),
        "w2": (0.02 * jax.random.normal(k5, (C, 2 * C))).astype(jnp.float32),
        "b2": (0.1 * jax.random.normal(k6, (2 * C,))).astype(jnp.float32),
    }


if __name__ == "__main__":
    B, N, C = 2, 16, 64   # batch, sequence, channels (2C = 128 -> lane-dense output)

    key = jax.random.PRNGKey(0)
    kx, ke, kp = jax.random.split(key, 3)
    x = jax.random.normal(kx, (B, N, C), jnp.float32)
    text_embed = jax.random.normal(ke, (B, N, C), jnp.float32)
    params = init_params(kp, C)

    out = jax.block_until_ready(feature_wise_affine(x, text_embed, params))
    ref = _reference(x, text_embed, params)

    assert out.shape == (B, N, C)
    # Tolerance reflects bf16 MXU operands (f32 accumulation); elementwise math is f32.
    np.testing.assert_allclose(np.asarray(out), np.asarray(ref), rtol=2e-2, atol=2e-2)

    print("KERNEL_OK")
</pallas_src>

<mosaic_0001>
module attributes {stable_mosaic.version = 11 : i64} {
  func.func @_fused_kernel(%arg0: i32, %arg1: i32, %arg2: memref<8x64xf32, #tpu.memory_space<vmem>>, %arg3: memref<8x64xf32, #tpu.memory_space<vmem>>, %arg4: memref<8x64xf32, #tpu.memory_space<vmem>>, %arg5: memref<8x64xf32, #tpu.memory_space<vmem>>, %arg6: memref<8x128xf32, #tpu.memory_space<vmem>>, %arg7: memref<8x128xf32, #tpu.memory_space<vmem>>, %arg8: memref<1x64xf32, #tpu.memory_space<vmem>>, %arg9: memref<1x64xf32, #tpu.memory_space<vmem>>, %arg10: memref<1x64xf32, #tpu.memory_space<vmem>>, %arg11: memref<1x64xf32, #tpu.memory_space<vmem>>, %arg12: memref<64x64xbf16, #tpu.memory_space<vmem>>, %arg13: memref<64x64xbf16, #tpu.memory_space<vmem>>, %arg14: memref<1x64xf32, #tpu.memory_space<vmem>>, %arg15: memref<64x128xbf16, #tpu.memory_space<vmem>>, %arg16: memref<1x128xf32, #tpu.memory_space<vmem>>, %arg17: memref<8x128xf32, #tpu.memory_space<vmem>>) attributes {dimension_semantics = [#tpu.dimension_semantics<parallel>, #tpu.dimension_semantics<parallel>], iteration_bounds = array<i64: 2, 1>, scalar_prefetch = 0 : i64, scratch_operands = 0 : i64, tpu.core_type = #tpu.core_type<tc>, window_params = [{transform_indices = @transform_0, window_bounds = array<i64: 8, 64>}, {transform_indices = @transform_1, window_bounds = array<i64: 8, 64>}, {transform_indices = @transform_2, window_bounds = array<i64: 8, 64>}, {transform_indices = @transform_3, window_bounds = array<i64: 8, 64>}, {transform_indices = @transform_4, window_bounds = array<i64: 8, 128>}, {transform_indices = @transform_5, window_bounds = array<i64: 8, 128>}, {pipeline_mode = #tpu.pipeline_mode<synchronous>, transform_indices = @transform_6, window_bounds = array<i64: 1, 64>}, {pipeline_mode = #tpu.pipeline_mode<synchronous>, transform_indices = @transform_7, window_bounds = array<i64: 1, 64>}, {pipeline_mode = #tpu.pipeline_mode<synchronous>, transform_indices = @transform_8, window_bounds = array<i64: 1, 64>}, {pipeline_mode = #tpu.pipeline_mode<synchronous>, transform_indices = @transform_9, window_bounds = array<i64: 1, 64>}, {pipeline_mode = #tpu.pipeline_mode<synchronous>, transform_indices = @transform_10, window_bounds = array<i64: 64, 64>}, {pipeline_mode = #tpu.pipeline_mode<synchronous>, transform_indices = @transform_11, window_bounds = array<i64: 64, 64>}, {pipeline_mode = #tpu.pipeline_mode<synchronous>, transform_indices = @transform_12, window_bounds = array<i64: 1, 64>}, {pipeline_mode = #tpu.pipeline_mode<synchronous>, transform_indices = @transform_13, window_bounds = array<i64: 64, 128>}, {pipeline_mode = #tpu.pipeline_mode<synchronous>, transform_indices = @transform_14, window_bounds = array<i64: 1, 128>}, {transform_indices = @transform_15, window_bounds = array<i64: 8, 128>}]} {
    %c0 = arith.constant 0 : index
    %c0_0 = arith.constant 0 : index
    %0 = vector.load %arg2[%c0, %c0_0] : memref<8x64xf32, #tpu.memory_space<vmem>>, vector<8x64xf32>
    %c0_1 = arith.constant 0 : index
    %c0_2 = arith.constant 0 : index
    %1 = vector.load %arg4[%c0_1, %c0_2] : memref<8x64xf32, #tpu.memory_space<vmem>>, vector<8x64xf32>
    %2 = tpu.concatenate %0, %1 in 0 : vector<8x64xf32>, vector<8x64xf32> -> vector<16x64xf32>
    %c0_3 = arith.constant 0 : index
    %c0_4 = arith.constant 0 : index
    %3 = vector.load %arg3[%c0_3, %c0_4] : memref<8x64xf32, #tpu.memory_space<vmem>>, vector<8x64xf32>
    %c0_5 = arith.constant 0 : index
    %c0_6 = arith.constant 0 : index
    %4 = vector.load %arg5[%c0_5, %c0_6] : memref<8x64xf32, #tpu.memory_space<vmem>>, vector<8x64xf32>
    %5 = tpu.concatenate %3, %4 in 0 : vector<8x64xf32>, vector<8x64xf32> -> vector<16x64xf32>
    %cst = arith.constant dense<0.000000e+00> : vector<16xf32>
    %6 = vector.multi_reduction <add>, %2, %cst [1] : vector<16x64xf32> to vector<16xf32>
    %7 = vector.shape_cast %6 : vector<16xf32> to vector<16x1xf32>
    %cst_7 = arith.constant dense<0.000000e+00> : vector<16xf32>
    %8 = vector.multi_reduction <add>, %5, %cst_7 [1] : vector<16x64xf32> to vector<16xf32>
    %9 = vector.shape_cast %8 : vector<16xf32> to vector<16x1xf32>
    %10 = arith.addf %7, %9 : vector<16x1xf32>
    %cst_8 = arith.constant 1.280000e+02 : f32
    %11 = vector.broadcast %cst_8 : f32 to vector<16x1xf32>
    %12 = arith.divf %10, %11 : vector<16x1xf32>
    %13 = vector.broadcast %12 : vector<16x1xf32> to vector<16x64xf32>
    %14 = arith.subf %2, %13 : vector<16x64xf32>
    %15 = vector.broadcast %12 : vector<16x1xf32> to vector<16x64xf32>
    %16 = arith.subf %5, %15 : vector<16x64xf32>
    %17 = arith.mulf %14, %14 : vector<16x64xf32>
    %cst_9 = arith.constant dense<0.000000e+00> : vector<16xf32>
    %18 = vector.multi_reduction <add>, %17, %cst_9 [1] : vector<16x64xf32> to vector<16xf32>
    %19 = vector.shape_cast %18 : vector<16xf32> to vector<16x1xf32>
    %20 = arith.mulf %16, %16 : vector<16x64xf32>
    %cst_10 = arith.constant dense<0.000000e+00> : vector<16xf32>
    %21 = vector.multi_reduction <add>, %20, %cst_10 [1] : vector<16x64xf32> to vector<16xf32>
    %22 = vector.shape_cast %21 : vector<16xf32> to vector<16x1xf32>
    %23 = arith.addf %19, %22 : vector<16x1xf32>
    %cst_11 = arith.constant 1.280000e+02 : f32
    %24 = vector.broadcast %cst_11 : f32 to vector<16x1xf32>
    %25 = arith.divf %23, %24 : vector<16x1xf32>
    %cst_12 = arith.constant 9.99999974E-6 : f32
    %26 = vector.broadcast %cst_12 : f32 to vector<16x1xf32>
    %27 = arith.addf %25, %26 : vector<16x1xf32>
    %28 = math.rsqrt %27 : vector<16x1xf32>
    %29 = vector.broadcast %28 : vector<16x1xf32> to vector<16x64xf32>
    %30 = arith.mulf %14, %29 : vector<16x64xf32>
    %c0_13 = arith.constant 0 : index
    %c0_14 = arith.constant 0 : index
    %31 = vector.load %arg8[%c0_13, %c0_14] : memref<1x64xf32, #tpu.memory_space<vmem>>, vector<1x64xf32>
    %32 = vector.broadcast %31 : vector<1x64xf32> to vector<16x64xf32>
    %33 = arith.mulf %30, %32 : vector<16x64xf32>
    %c0_15 = arith.constant 0 : index
    %c0_16 = arith.constant 0 : index
    %34 = vector.load %arg10[%c0_15, %c0_16] : memref<1x64xf32, #tpu.memory_space<vmem>>, vector<1x64xf32>
    %35 = vector.broadcast %34 : vector<1x64xf32> to vector<16x64xf32>
    %36 = arith.addf %33, %35 : vector<16x64xf32>
    %37 = vector.broadcast %28 : vector<16x1xf32> to vector<16x64xf32>
    %38 = arith.mulf %16, %37 : vector<16x64xf32>
    %c0_17 = arith.constant 0 : index
    %c0_18 = arith.constant 0 : index
    %39 = vector.load %arg9[%c0_17, %c0_18] : memref<1x64xf32, #tpu.memory_space<vmem>>, vector<1x64xf32>
    %40 = vector.broadcast %39 : vector<1x64xf32> to vector<16x64xf32>
    %41 = arith.mulf %38, %40 : vector<16x64xf32>
    %c0_19 = arith.constant 0 : index
    %c0_20 = arith.constant 0 : index
    %42 = vector.load %arg11[%c0_19, %c0_20] : memref<1x64xf32, #tpu.memory_space<vmem>>, vector<1x64xf32>
    %43 = vector.broadcast %42 : vector<1x64xf32> to vector<16x64xf32>
    %44 = arith.addf %41, %43 : vector<16x64xf32>
    %45 = arith.truncf %36 : vector<16x64xf32> to vector<16x64xbf16>
    %c0_21 = arith.constant 0 : index
    %c0_22 = arith.constant 0 : index
    %46 = vector.load %arg12[%c0_21, %c0_22] : memref<64x64xbf16, #tpu.memory_space<vmem>>, vector<64x64xbf16>
    %cst_23 = arith.constant dense<0.000000e+00> : vector<16x64xf32>
    %47 = tpu.matmul %45, %46, %cst_23 {dimension_numbers = #tpu.dot_dimension_numbers<[1], [0], [0], [1], [0, 0, 1, 1], [], []>} : vector<16x64xbf16>, vector<64x64xbf16>, vector<16x64xf32> -> vector<16x64xf32>
    %48 = arith.truncf %44 : vector<16x64xf32> to vector<16x64xbf16>
    %c0_24 = arith.constant 0 : index
    %c0_25 = arith.constant 0 : index
    %49 = vector.load %arg13[%c0_24, %c0_25] : memref<64x64xbf16, #tpu.memory_space<vmem>>, vector<64x64xbf16>
    %cst_26 = arith.constant dense<0.000000e+00> : vector<16x64xf32>
    %50 = tpu.matmul %48, %49, %cst_26 {dimension_numbers = #tpu.dot_dimension_numbers<[1], [0], [0], [1], [0, 0, 1, 1], [], []>} : vector<16x64xbf16>, vector<64x64xbf16>, vector<16x64xf32> -> vector<16x64xf32>
    %51 = arith.addf %47, %50 : vector<16x64xf32>
    %c0_27 = arith.constant 0 : index
    %c0_28 = arith.constant 0 : index
    %52 = vector.load %arg14[%c0_27, %c0_28] : memref<1x64xf32, #tpu.memory_space<vmem>>, vector<1x64xf32>
    %53 = vector.broadcast %52 : vector<1x64xf32> to vector<16x64xf32>
    %54 = arith.addf %51, %53 : vector<16x64xf32>
    %cst_29 = arith.constant 5.000000e-01 : f32
    %55 = vector.broadcast %cst_29 : f32 to vector<16x64xf32>
    %56 = arith.mulf %55, %54 : vector<16x64xf32>
    %cst_30 = arith.constant 0.707106769 : f32
    %57 = vector.broadcast %cst_30 : f32 to vector<16x64xf32>
    %58 = arith.mulf %54, %57 : vector<16x64xf32>
    %59 = math.erf %58 : vector<16x64xf32>
    %cst_31 = arith.constant 1.000000e+00 : f32
    %60 = vector.broadcast %cst_31 : f32 to vector<16x64xf32>
    %61 = arith.addf %60, %59 : vector<16x64xf32>
    %62 = arith.mulf %56, %61 : vector<16x64xf32>
    %63 = arith.truncf %62 : vector<16x64xf32> to vector<16x64xbf16>
    %c0_32 = arith.constant 0 : index
    %c0_33 = arith.constant 0 : index
    %64 = vector.load %arg15[%c0_32, %c0_33] : memref<64x128xbf16, #tpu.memory_space<vmem>>, vector<64x128xbf16>
    %cst_34 = arith.constant dense<0.000000e+00> : vector<16x128xf32>
    %65 = tpu.matmul %63, %64, %cst_34 {dimension_numbers = #tpu.dot_dimension_numbers<[1], [0], [0], [1], [0, 0, 1, 1], [], []>} : vector<16x64xbf16>, vector<64x128xbf16>, vector<16x128xf32> -> vector<16x128xf32>
    %c0_35 = arith.constant 0 : index
    %c0_36 = arith.constant 0 : index
    %66 = vector.load %arg16[%c0_35, %c0_36] : memref<1x128xf32, #tpu.memory_space<vmem>>, vector<1x128xf32>
    %67 = vector.broadcast %66 : vector<1x128xf32> to vector<16x128xf32>
    %68 = arith.addf %65, %67 : vector<16x128xf32>
    %69 = vector.extract_strided_slice %68 {offsets = [0, 0], sizes = [8, 128], strides = [1, 1]} : vector<16x128xf32> to vector<8x128xf32>
    %70 = vector.extract_strided_slice %68 {offsets = [8, 0], sizes = [8, 128], strides = [1, 1]} : vector<16x128xf32> to vector<8x128xf32>
    %c0_37 = arith.constant 0 : index
    %c0_38 = arith.constant 0 : index
    %71 = vector.load %arg6[%c0_37, %c0_38] : memref<8x128xf32, #tpu.memory_space<vmem>>, vector<8x128xf32>
    %72 = arith.mulf %69, %71 : vector<8x128xf32>
    %c0_39 = arith.constant 0 : index
    %c0_40 = arith.constant 0 : index
    %73 = vector.load %arg7[%c0_39, %c0_40] : memref<8x128xf32, #tpu.memory_space<vmem>>, vector<8x128xf32>
    %74 = arith.mulf %70, %73 : vector<8x128xf32>
    %75 = arith.addf %72, %74 : vector<8x128xf32>
    %c0_41 = arith.constant 0 : index
    %c0_42 = arith.constant 0 : index
    %76 = vector.load %arg17[%c0_41, %c0_42] : memref<8x128xf32, #tpu.memory_space<vmem>>, vector<8x128xf32>
    tpu.vector_store %arg17[%c0_41, %c0_42], %75 {strides = array<i32>} : memref<8x128xf32, #tpu.memory_space<vmem>>, vector<8x128xf32>,
    return
  }
  func.func @transform_0(%arg0: i32, %arg1: i32) -> (i32, i32) {
    %c2_i32 = arith.constant 2 : i32
    %0 = arith.muli %arg0, %c2_i32 : i32
    %1 = arith.addi %0, %arg1 : i32
    %c0_i32 = arith.constant 0 : i32
    %c0_i32_0 = arith.constant 0 : i32
    return %1, %c0_i32 : i32, i32
  }
  func.func @transform_1(%arg0: i32, %arg1: i32) -> (i32, i32) {
    %c2_i32 = arith.constant 2 : i32
    %0 = arith.muli %arg0, %c2_i32 : i32
    %1 = arith.addi %0, %arg1 : i32
    %c0_i32 = arith.constant 0 : i32
    %c0_i32_0 = arith.constant 0 : i32
    return %1, %c0_i32 : i32, i32
  }
  func.func @transform_2(%arg0: i32, %arg1: i32) -> (i32, i32) {
    %c2_i32 = arith.constant 2 : i32
    %0 = arith.muli %arg0, %c2_i32 : i32
    %c1_i32 = arith.constant 1 : i32
    %1 = arith.addi %0, %c1_i32 : i32
    %2 = arith.addi %1, %arg1 : i32
    %c0_i32 = arith.constant 0 : i32
    %c0_i32_0 = arith.constant 0 : i32
    return %2, %c0_i32 : i32, i32
  }
  func.func @transform_3(%arg0: i32, %arg1: i32) -> (i32, i32) {
    %c2_i32 = arith.constant 2 : i32
    %0 = arith.muli %arg0, %c2_i32 : i32
    %c1_i32 = arith.constant 1 : i32
    %1 = arith.addi %0, %c1_i32 : i32
    %2 = arith.addi %1, %arg1 : i32
    %c0_i32 = arith.constant 0 : i32
    %c0_i32_0 = arith.constant 0 : i32
    return %2, %c0_i32 : i32, i32
  }
  func.func @transform_4(%arg0: i32, %arg1: i32) -> (i32, i32) {
    %c1_i32 = arith.constant 1 : i32
    %0 = arith.muli %arg0, %c1_i32 : i32
    %1 = arith.addi %0, %arg1 : i32
    %c0_i32 = arith.constant 0 : i32
    %c0_i32_0 = arith.constant 0 : i32
    return %1, %c0_i32 : i32, i32
  }
  func.func @transform_5(%arg0: i32, %arg1: i32) -> (i32, i32) {
    %c1_i32 = arith.constant 1 : i32
    %0 = arith.muli %arg0, %c1_i32 : i32
    %1 = arith.addi %0, %arg1 : i32
    %c0_i32 = arith.constant 0 : i32
    %c0_i32_0 = arith.constant 0 : i32
    return %1, %c0_i32 : i32, i32
  }
  func.func @transform_6(%arg0: i32, %arg1: i32) -> (i32, i32) {
    %c0_i32 = arith.constant 0 : i32
    %c0_i32_0 = arith.constant 0 : i32
    %c0_i32_1 = arith.constant 0 : i32
    return %c0_i32, %c0_i32_0 : i32, i32
  }
  func.func @transform_7(%arg0: i32, %arg1: i32) -> (i32, i32) {
    %c0_i32 = arith.constant 0 : i32
    %c0_i32_0 = arith.constant 0 : i32
    %c0_i32_1 = arith.constant 0 : i32
    return %c0_i32, %c0_i32_0 : i32, i32
  }
  func.func @transform_8(%arg0: i32, %arg1: i32) -> (i32, i32) {
    %c0_i32 = arith.constant 0 : i32
    %c0_i32_0 = arith.constant 0 : i32
    %c0_i32_1 = arith.constant 0 : i32
    return %c0_i32, %c0_i32_0 : i32, i32
  }
  func.func @transform_9(%arg0: i32, %arg1: i32) -> (i32, i32) {
    %c0_i32 = arith.constant 0 : i32
    %c0_i32_0 = arith.constant 0 : i32
    %c0_i32_1 = arith.constant 0 : i32
    return %c0_i32, %c0_i32_0 : i32, i32
  }
  func.func @transform_10(%arg0: i32, %arg1: i32) -> (i32, i32) {
    %c0_i32 = arith.constant 0 : i32
    %c0_i32_0 = arith.constant 0 : i32
    %c0_i32_1 = arith.constant 0 : i32
    return %c0_i32, %c0_i32_0 : i32, i32
  }
  func.func @transform_11(%arg0: i32, %arg1: i32) -> (i32, i32) {
    %c0_i32 = arith.constant 0 : i32
    %c0_i32_0 = arith.constant 0 : i32
    %c0_i32_1 = arith.constant 0 : i32
    return %c0_i32, %c0_i32_0 : i32, i32
  }
  func.func @transform_12(%arg0: i32, %arg1: i32) -> (i32, i32) {
    %c0_i32 = arith.constant 0 : i32
    %c0_i32_0 = arith.constant 0 : i32
    %c0_i32_1 = arith.constant 0 : i32
    return %c0_i32, %c0_i32_0 : i32, i32
  }
  func.func @transform_13(%arg0: i32, %arg1: i32) -> (i32, i32) {
    %c0_i32 = arith.constant 0 : i32
    %c0_i32_0 = arith.constant 0 : i32
    %c0_i32_1 = arith.constant 0 : i32
    return %c0_i32, %c0_i32_0 : i32, i32
  }
  func.func @transform_14(%arg0: i32, %arg1: i32) -> (i32, i32) {
    %c0_i32 = arith.constant 0 : i32
    %c0_i32_0 = arith.constant 0 : i32
    %c0_i32_1 = arith.constant 0 : i32
    return %c0_i32, %c0_i32_0 : i32, i32
  }
  func.func @transform_15(%arg0: i32, %arg1: i32) -> (i32, i32) {
    %c1_i32 = arith.constant 1 : i32
    %0 = arith.muli %arg0, %c1_i32 : i32
    %1 = arith.addi %0, %arg1 : i32
    %c0_i32 = arith.constant 0 : i32
    %c0_i32_0 = arith.constant 0 : i32
    return %1, %c0_i32 : i32, i32
  }
}

</mosaic_0001>

<bundles_post_ra>
// kernel: feature_wise_affine.1
= control target key start
LH: loop header
LB: loop body
LE: loop exit
PB: predicated region body
PF: predicated region fallthrough
CT: control target
= control target key end

     0   :  { %s1405_s18 = smov 0   ;;  %s1407_s19 = smov 0   ;;  %s1541_s0 = inlined_call_operand.vmem [shape: f32[32,64], index: 0, kind: input, shape index: {}, may-alias: {0,2}]   ;;  %s1542_s1 = inlined_call_operand.vmem [shape: f32[32,64], index: 1, kind: input, shape index: {}, may-alias: {1,3}]   ;;  %s1543_s2 = inlined_call_operand.vmem [shape: f32[32,64], index: 2, kind: input, shape index: {}, may-alias: {0,2}]   ;;  %s1544_s3 = inlined_call_operand.vmem [shape: f32[32,64], index: 3, kind: input, shape index: {}, may-alias: {1,3}]   ;;  %s1545_s4 = inlined_call_operand.vmem [shape: f32[16,128], index: 4, kind: input, shape index: {}]   ;;  %s1546_s5 = inlined_call_operand.vmem [shape: f32[16,128], index: 5, kind: input, shape index: {}]   ;;  %s1547_s6 = inlined_call_operand.vmem [shape: f32[1,64], index: 6, kind: input, shape index: {}]   ;;  %s1548_s7 = inlined_call_operand.vmem [shape: f32[1,64], index: 7, kind: input, shape index: {}]   ;;  %s1549_s8 = inlined_call_operand.vmem [shape: f32[1,64], index: 8, kind: input, shape index: {}]   ;;  %s1550_s9 = inlined_call_operand.vmem [shape: f32[1,64], index: 9, kind: input, shape index: {}]   ;;  %s1551_s10 = inlined_call_operand.vmem [shape: bf16[64,64], index: 10, kind: input, shape index: {}]   ;;  %s1552_s11 = inlined_call_operand.vmem [shape: bf16[64,64], index: 11, kind: input, shape index: {}]   ;;  %s1553_s12 = inlined_call_operand.vmem [shape: f32[1,64], index: 12, kind: input, shape index: {}]   ;;  %s1554_s13 = inlined_call_operand.vmem [shape: bf16[64,128], index: 13, kind: input, shape index: {}]   ;;  %s1555_s14 = inlined_call_operand.vmem [shape: f32[1,128], index: 14, kind: input, shape index: {}]   ;;  %s1556_s15 = inlined_call_operand.vmem [shape: f32[16,128], index: 15, kind: output, shape index: {}]  }
   0x1   :  { %s1409_s20 = smov 0  }
   0x2 LB: > { %1559 = sst [smem:[#allocation2_spill]] %s1317_s19  ;;  %s37_s21 = sadd.s32 1, %s1317_s19  ;;  %s1321_s20 = sphi %s1409_s20, %s25_s20   ;;  %s1317_s19 = sphi %s1407_s19, %s1564_s19   ;;  %s1313_s18 = sphi %s1405_s18, %s1563_s18  }
   0x3   : > { %1560 = sst [smem:[#allocation3_spill]] %s1321_s20  ;;  %p1167_p0 = scmp.ge.s32.totalorder %s1321_s20, 1 }
   0x4   : > { %p39_p1 = scmp.ge.s32.totalorder %s37_s21, 2  ;;  %p543_p2 = scmp.lt.s32.totalorder %s1321_s20, 3 }
   0x6   : > { %s1566_s21 = smov (%p39_p1, %s37_s21), 0  ;;  %p544_p3 = pnand %p1167_p0, %p543_p2 }
   0x7   : > { %1561 = sst [smem:[#allocation4_spill]] %s1566_s21  ;;  %s1168_s22 = sshll.u32 (!%p544_p3), %s1313_s18, 1 }
   0x8   : > { %547 = sbr.rel (%p544_p3) target bundleno = 767 (0x2ff), region = 80  ;;  %p624_p4 = scmp.lt.s32.totalorder (!%p544_p3), %s1168_s22, 3 }
   0x9   : > { %s639_s23 = sadd.s32 (!%p544_p3), 1, %s1168_s22  ;;  %p659_p6 = scmp.lt.s32.totalorder (!%p544_p3), %s1313_s18, 1 }
   0xa   : > { %p641_p5 = scmp.lt.s32.totalorder (!%p544_p3), %s639_s23, 3 }
   0xd   : > { %s1568_s22 = smov (!%p624_p4, %s1168_s22), 3  ;;  %s1570_s23 = smov (!%p641_p5, %s639_s23), 3  ;;  %vm681_vm0 = vcmask 523264   ;;  %v1279_v28 = vld [vmem:[%s1552_s11 + $0x18] sm:$0xff]   ;;  %v1323_v30 = vmov 0.0   ;;  %v1281_v31 = vld [vmem:[%s1552_s11 + $0x10] sm:$0xff]  }
   0xe   : > { %s1169_s24 = sshll.u32 %s1568_s22, 3  ;;  %s1173_s16 = sshll.u32 %s1570_s23, 3  ;;  %v1280_v29 = vld [vmem:[%s1551_s10 + $0x18] sm:$0xff]   ;;  %1217 = vmatprep.subr.bf16.mxu0 %v1323_v30  ;;  %1229 = vmatprep.subr.bf16.mxu1 %v1323_v30  ;;  %v1282_v32 = vld [vmem:[%s1551_s10 + $0x10] sm:$0xff]   ;;  %vm1324_vm1 = vmmov 0   ;;  %v1283_v33 = vld [vmem:[%s1552_s11 + $0x8] sm:$0xff]  }
   0xf   : > { %s635_s27 = scalar_lea.vmem %s1542_s1, %s1169_s24  ;;  %s627_s30 = scalar_lea.vmem %s1541_s0, %s1169_s24  ;;  %1218 = vmatpush3.bf16.msra.mxu0 %v1279_v28  ;;  %1230 = vmatpush3.bf16.msra.mxu1 %v1280_v29  ;;  %v1284_v34 = vld [vmem:[%s1551_s10 + $0x8] sm:$0xff]   ;;  %v1285_v35 = vld [vmem:[%s1552_s11] sm:$0xff]  }
  0x10   : > { %v679_v0 = vld [vmem:[%s635_s27] sm:$0xff]  ;;  %s654_s22 = scalar_lea.vmem %s1544_s3, %s1173_s16  ;;  %s644_s25 = scalar_lea.vmem %s1543_s2, %s1173_s16  ;;  %1219 = vmatprep.subr.bf16.mxu0 %v1323_v30  ;;  %1231 = vmatprep.subr.bf16.mxu1 %v1323_v30 }
  0x11   : > { %v677_v1 = vld [vmem:[%s627_s30] sm:$0xff]  ;;  %v688_v2 = vsel %vm681_vm0, %v679_v0, 0.0  ;;  %1225 = vmatprep.mubr.msk.bf16.mxu0 %vm1324_vm1, %v1323_v30  ;;  %1237 = vmatprep.mubr.msk.bf16.mxu1 %vm1324_vm1, %v1323_v30  ;;  %s1572_s18 = smov (!%p659_p6, %s1313_s18), 1 }
  0x12   : > { %v682_v3 = vsel %vm681_vm0, %v677_v1, 0.0  ;;  %689 = vadd.xlane.f32.xlu1 %v688_v2  ;;  %v680_v4 = vld [vmem:[%s654_s22] sm:$0xff]  ;;  %s1176_s27 = sshll.u32 %s1572_s18, 3 }
  0x13   : > { %683 = vadd.xlane.f32.xlu0 %v682_v3  ;;  %v678_v5 = vld [vmem:[%s644_s25] sm:$0xff]  ;;  %v691_v6 = vsel %vm681_vm0, %v680_v4, 0.0  ;;  %1220 = vmatpush3.bf16.msra.mxu0 %v1281_v31  ;;  %v1287_v3 = vld [vmem:[%s1554_s13 + $0x18] sm:$0xff]   ;;  %s662_s17 = scalar_lea.vmem %s1545_s4, %s1176_s27  ;;  %s668_s19 = scalar_lea.vmem %s1546_s5, %s1176_s27 }
  0x14   : > { %v685_v7 = vsel %vm681_vm0, %v678_v5, 0.0  ;;  %1232 = vmatpush3.bf16.msra.mxu1 %v1282_v32  ;;  %1221 = vmatprep.subr.bf16.mxu0 %v1323_v30  ;;  %v1286_v36 = vld [vmem:[%s1551_s10] sm:$0xff]   ;;  %s674_s21 = scalar_lea.vmem %s1556_s15, %s1176_s27 }
  0x15   : > { %1233 = vmatprep.subr.bf16.mxu1 %v1323_v30  ;;  %v1181_v50 = vld [vmem:[%s1548_s7] ss:$0 sm:$0xff] }
  0x16   : > { %692 = vadd.xlane.f32.xlu1 %v691_v6  ;;  %v1179_v51 = vld [vmem:[%s1547_s6] ss:$0 sm:$0xff] }
  0x17   : > { %686 = vadd.xlane.f32.xlu0 %v685_v7  ;;  %1222 = vmatpush3.bf16.msra.mxu0 %v1283_v33  ;;  %v1182_v57 = vld [vmem:[%s1550_s9] ss:$0 sm:$0xff] }
  0x18   : > { %1234 = vmatpush3.bf16.msra.mxu1 %v1284_v34  ;;  %1223 = vmatprep.subr.bf16.mxu0 %v1323_v30  ;;  %v1180_v58 = vld [vmem:[%s1549_s8] ss:$0 sm:$0xff] }
  0x19   : > { %1235 = vmatprep.subr.bf16.mxu1 %v1323_v30  ;;  %v1290_v6 = vld [vmem:[%s1554_s13] sm:$0xff]  }
  0x1a   : > { %v1194_v31 = vld [vmem:[%s1555_s14] ss:$0 sm:$0xff] }
  0x1b   : > { %1224 = vmatpush3.bf16.msra.mxu0 %v1285_v35  ;;  %v1024_v35 = vld [vmem:[%s662_s17] sm:$0xff] }
  0x1c   : > { %1236 = vmatpush3.bf16.msra.mxu1 %v1286_v36  ;;  %1241 = vmatprep.subr.bf16.mxu0 %v1323_v30 }
  0x9b   : > { %v690_v8 = vpop.xlane.xlu1 %689 }
  0x9c   : > { %v684_v9 = vpop.xlane.xlu0 %683 }
  0x9d   : > { %v694_v10 = vadd.f32 %v690_v8, %v684_v9  ;;  %v1193_v9 = vld [vmem:[%s1553_s12] ss:$0 sm:$0xff] }
  0x9f   : > { %v697_v11 = vmul.f32 0.0078125, %v694_v10  ;;  %v693_v12 = vpop.xlane.xlu1 %692 }
  0xa0   : > { %v687_v13 = vpop.xlane.xlu0 %686 }
  0xa1   : > { %v699_v14 = vsub.f32 %v677_v1, %v697_v11  ;;  %v701_v15 = vsub.f32 %v679_v0, %v697_v11  ;;  %v695_v16 = vadd.f32 %v693_v12, %v687_v13 }
  0xa3   : > { %v698_v17 = vmul.f32 0.0078125, %v695_v16  ;;  %v703_v18 = vmul.f32 %v699_v14, %v699_v14  ;;  %v711_v22 = vmul.f32 %v701_v15, %v701_v15 }
  0xa5   : > { %v700_v19 = vsub.f32 %v678_v5, %v698_v17  ;;  %v702_v20 = vsub.f32 %v680_v4, %v698_v17  ;;  %v705_v21 = vsel %vm681_vm0, %v703_v18, 0.0  ;;  %v713_v24 = vsel %vm681_vm0, %v711_v22, 0.0  ;;  %v1288_v4 = vld [vmem:[%s1554_s13 + $0x10] sm:$0xff]   ;;  %v1289_v5 = vld [vmem:[%s1554_s13 + $0x8] sm:$0xff]  }
  0xa6   : > { %706 = vadd.xlane.f32.xlu0 %v705_v21 }
  0xa7   : > { %v704_v23 = vmul.f32 %v700_v19, %v700_v19  ;;  %v712_v26 = vmul.f32 %v702_v20, %v702_v20 }
  0xa9   : > { %v708_v25 = vsel %vm681_vm0, %v704_v23, 0.0  ;;  %v716_v27 = vsel %vm681_vm0, %v712_v26, 0.0 }
  0xaa   : > { %714 = vadd.xlane.f32.xlu0 %v713_v24  ;;  %709 = vadd.xlane.f32.xlu1 %v708_v25 }
  0xae   : > { %717 = vadd.xlane.f32.xlu1 %v716_v27 }
 0x12f   : > { %v707_v37 = vpop.xlane.xlu0 %706 }
 0x133   : > { %v710_v38 = vpop.xlane.xlu1 %709  ;;  %v715_v39 = vpop.xlane.xlu0 %714 }
 0x134   : > { %v719_v40 = vadd.f32 %v715_v39, %v707_v37  ;;  %v1026_v37 = vld [vmem:[%s668_s19] sm:$0xff] }
 0x136   : > { %v721_v41 = vmul.f32 0.0078125, %v719_v40 }
 0x137   : > { %v718_v42 = vpop.xlane.xlu1 %717 }
 0x138   : > { %v723_v43 = vadd.f32 1e-05, %v721_v41  ;;  %v720_v44 = vadd.f32 %v718_v42, %v710_v38 }
 0x13a   : > { %1291 = vrsqrt.f32 %v723_v43  ;;  %v722_v45 = vmul.f32 0.0078125, %v720_v44 }
 0x13c   : > { %v724_v46 = vadd.f32 1e-05, %v722_v45 }
 0x13e   : > { %1293 = vrsqrt.f32 %v724_v46 }
 0x147   : > { %v1292_v47 = vpop.eup %1291 }
 0x148   : > { %v747_v48 = vmul.f32 %v1292_v47, %v701_v15  ;;  %v727_v49 = vmul.f32 %v1292_v47, %v699_v14 }
 0x14a   : > { %v756_v54 = vmul.f32 %v1181_v50, %v747_v48  ;;  %v736_v56 = vmul.f32 %v1179_v51, %v727_v49 }
 0x14b   : > { %v1294_v52 = vpop.eup %1293 }
 0x14c   : > { %v748_v53 = vmul.f32 %v1294_v52, %v702_v20  ;;  %v728_v55 = vmul.f32 %v1294_v52, %v700_v19  ;;  %v765_v61 = vadd.f32 %v1182_v57, %v756_v54  ;;  %v745_v63 = vadd.f32 %v1180_v58, %v736_v56 }
 0x14e   : > { %v757_v59 = vmul.f32 %v1181_v50, %v748_v53  ;;  %v737_v60 = vmul.f32 %v1179_v51, %v728_v55 }
 0x150   : > { %v766_v62 = vadd.f32 %v1182_v57, %v757_v59  ;;  %v746_v0 = vadd.f32 %v1180_v58, %v737_v60 }
 0x152   : > { %v776_v1 = vpack.c.bf16 %v766_v62, %v765_v61  ;;  %v767_v2 = vpack.c.bf16 %v746_v0, %v745_v63 }
 0x154   : > { %1226 = vmatmul.mubr.msk.bf16.vlgmr.msra.gmra.mxu0 %vm681_vm0, %v776_v1  ;;  %1238 = vmatmul.mubr.msk.bf16.vlgmr.msra.gmra.mxu1 %vm681_vm0, %v767_v2 }
 0x155   : > { %1249 = vmatprep.mubr.msk.bf16.mxu0 %vm1324_vm1, %v1323_v30  ;;  %1242 = vmatpush3.bf16.msra.mxu0 %v1287_v3 }
 0x156   : > { %1243 = vmatprep.subr.bf16.mxu0 %v1323_v30 }
 0x159   : > { %1244 = vmatpush3.bf16.msra.mxu0 %v1288_v4 }
 0x15a   : > { %1245 = vmatprep.subr.bf16.mxu0 %v1323_v30 }
 0x15d   : > { %1246 = vmatpush3.bf16.msra.mxu0 %v1289_v5 }
 0x15e   : > { %1247 = vmatprep.subr.bf16.mxu0 %v1323_v30 }
 0x161   : > { %1248 = vmatpush3.bf16.msra.mxu0 %v1290_v6 }
 0x214   : > { %v846_v7 = vpop.f32.mrf.mxu0  ;;  %v914_v8 = vpop.f32.mrf.mxu1 }
 0x215   : > { %v915_v10 = vadd.f32 %v914_v8, %v846_v7 }
 0x216   : > { %v1227_v11 = vpop.f32.mrf.mxu0  ;;  %v1239_v12 = vpop.f32.mrf.mxu1 }
 0x217   : > { %v928_v13 = vadd.f32 %v1193_v9, %v915_v10 }
 0x218   : > { %v849_v14 = vpop.f32.mrf.mxu0  ;;  %v917_v15 = vpop.f32.mrf.mxu1 }
 0x219   : > { %v932_v16 = vmul.f32 0.70710677, %v928_v13  ;;  %v918_v17 = vadd.f32 %v917_v15, %v849_v14  ;;  %v930_v25 = vmul.f32 0.5, %v928_v13 }
 0x21a   : > { %v1228_v18 = vpop.f32.mrf.mxu0  ;;  %v1240_v19 = vpop.f32.mrf.mxu1 }
 0x21b   : > { %1295 = verf.f32 %v932_v16  ;;  %v929_v20 = vadd.f32 %v1193_v9, %v918_v17 }
 0x21d   : > { %v933_v21 = vmul.f32 0.70710677, %v929_v20  ;;  %v931_v26 = vmul.f32 0.5, %v929_v20 }
 0x21f   : > { %1297 = verf.f32 %v933_v21 }
 0x228   : > { %v1296_v22 = vpop.eup %1295 }
 0x229   : > { %v936_v23 = vadd.f32 1.0, %v1296_v22 }
 0x22b   : > { %v938_v28 = vmul.f32 %v936_v23, %v930_v25 }
 0x22c   : > { %v1298_v24 = vpop.eup %1297 }
 0x22d   : > { %v937_v27 = vadd.f32 1.0, %v1298_v24 }
 0x22f   : > { %v939_v29 = vmul.f32 %v937_v27, %v931_v26 }
 0x231   : > { %v940_v30 = vpack.c.bf16 %v939_v29, %v938_v28 }
 0x233   : > { %1250 = vmatmul.mubr.msk.bf16.vlgmr.msra.gmra.mxu0 %vm681_vm0, %v940_v30 }
 0x2f3   : > { %v1017_v32 = vpop.f32.mrf.mxu0 }
 0x2f4   : > { %v1018_v34 = vadd.f32 %v1194_v31, %v1017_v32 }
 0x2f5   : > { %v1251_v33 = vpop.f32.mrf.mxu0 }
 0x2f6   : > { %v1025_v40 = vmul.f32 %v1024_v35, %v1018_v34 }
 0x2f7   : > { %v1020_v36 = vpop.f32.mrf.mxu0 }
 0x2f8   : > { %v1021_v38 = vadd.f32 %v1194_v31, %v1020_v36 }
 0x2f9   : > { %v1252_v39 = vpop.f32.mrf.mxu0 }
 0x2fa   : > { %v1027_v41 = vmul.f32 %v1026_v37, %v1021_v38 }
 0x2fc   : > { %v1028_v42 = vadd.f32 %v1027_v41, %v1025_v40 }
 0x2fe   : > { %1029 = vst [vmem:[%s674_s21] sm:$0xff] %v1028_v42 }
 0x2ff PF: > { %s1562_s23 = sld [smem:[#allocation3_spill]] }
 0x300   : > { %s1563_s18 = sld [smem:[#allocation2_spill]] }
 0x301   : > { %s1564_s19 = sld [smem:[#allocation4_spill]] }
 0x305   : > { %s25_s20 = sadd.s32 1, %s1562_s23  }
 0x306   : > { %p22_p7 = scmp.ge.s32.totalorder %s25_s20, 4  }
 0x308   :  { %24 = sbr.rel (!%p22_p7) target bundleno = 2 (0x2), region = 125 }

</bundles_post_ra>
